<compile_context>
chip_gen: v5e
topology: v5e:2x2
jax: 0.10.0
libtpu: 0.0.40
codegen_flags: <defaults>
</compile_context>

<pallas_src>
import functools

import jax
import jax.numpy as jnp
from jax.experimental import pallas as pl
from jax.experimental.pallas import tpu as pltpu

LANE = 128
MAX_ROW_TILE = 1024   # rows per block -> (1024, 128) f32 = 512 KiB per input buffer
NCORES = 2            # leading 'parallel' grid axis (v7x megacore; no-op elsewhere)


def _round_up(x, m):
    return ((x + m - 1) // m) * m


def _sg_bce_kernel(yp_ref, yt_ref, out_ref, acc_ref, *, inv_n):
    step = pl.program_id(1)

    @pl.when(step == 0)
    def _():
        acc_ref[...] = jnp.zeros_like(acc_ref)

    yp = yp_ref[...]
    yt = yt_ref[...]

    eps = jnp.float32(1e-14)
    one = jnp.float32(1.0)
    # factor = 1 / (1 + exp(-5 * (1 - yp - 0.5)))  (EUP exp; VPU for the rest)
    factor = one / (one + jnp.exp(jnp.float32(-5.0) * (jnp.float32(0.5) - yp)))
    rbce = -yt * jnp.log(yp + eps) - (one - yt) * factor * jnp.log(one - yp + eps)

    # Cheap partial reduce: fold the (row_tile, 128) tile down to a single
    # (8, 128) vreg-shaped partial with plain elementwise adds (VPU only) and
    # accumulate; the cross-lane XLU reduce is deferred to the wrapper.
    acc_ref[...] += rbce.reshape(-1, 8, LANE).sum(axis=0)

    @pl.when(step == pl.num_programs(1) - 1)
    def _():
        out_ref[...] = acc_ref[...] * jnp.float32(inv_n)


def sg_bce_loss(y_pred, y_true):
    """JAX/Pallas equivalent of PyTorch sg_bce_loss.forward (NCHW inputs)."""
    B, C, W, H = y_pred.shape
    n = B * C * W * H

    rows_raw = pl.cdiv(n, LANE)
    row_tile = min(MAX_ROW_TILE, _round_up(pl.cdiv(rows_raw, NCORES), 8))
    steps_per_core = pl.cdiv(rows_raw, NCORES * row_tile)
    rows_padded = NCORES * steps_per_core * row_tile
    n_padded = rows_padded * LANE

    yp = y_pred.astype(jnp.float32).reshape(-1)
    yt = y_true.astype(jnp.float32).reshape(-1)
    pad = n_padded - n
    if pad:
        # yt = 1, yp = 1 contributes exactly 0 to the sum in f32:
        #   -1*log(1 + 1e-14) == 0   and   (1-1)*factor*log(eps) == 0.
        yp = jnp.pad(yp, (0, pad), constant_values=1.0)
        yt = jnp.pad(yt, (0, pad), constant_values=1.0)
    yp2 = yp.reshape(rows_padded, LANE)
    yt2 = yt.reshape(rows_padded, LANE)

    def row_block_map(c, i):
        return (c * steps_per_core + i, 0)

    out = pl.pallas_call(
        functools.partial(_sg_bce_kernel, inv_n=1.0 / n),
        out_shape=jax.ShapeDtypeStruct((NCORES * 8, LANE), jnp.float32),
        grid_spec=pltpu.PrefetchScalarGridSpec(
            num_scalar_prefetch=0,
            grid=(NCORES, steps_per_core),
            in_specs=[
                pl.BlockSpec((row_tile, LANE), row_block_map),
                pl.BlockSpec((row_tile, LANE), row_block_map),
            ],
            out_specs=pl.BlockSpec((8, LANE), lambda c, i: (c, 0)),
            scratch_shapes=[pltpu.VMEM((8, LANE), jnp.float32)],
        ),
        compiler_params=pltpu.CompilerParams(
            dimension_semantics=("parallel", "arbitrary"),
        ),
    )(yp2, yt2)

    # Tiny final reduction over the (NCORES*8, 128) lane-dense partials.
    return jnp.sum(out)


def _reference(y_pred, y_true):
    eps = 1e-14
    factor = 1.0 / (1.0 + jnp.exp(-5.0 * (1.0 - y_pred - 0.5)))
    rbce = -y_true * jnp.log(y_pred + eps) - (1.0 - y_true) * factor * jnp.log(1.0 - y_pred + eps)
    return jnp.sum(rbce) / y_pred.size


if __name__ == "__main__":
    key = jax.random.PRNGKey(0)
    k1, k2 = jax.random.split(key)
    B, C, W, H = 2, 4, 16, 16
    # y_pred: probabilities in (0, 1); y_true: binary mask
    y_pred = jax.random.uniform(
        k1, (B, C, W, H), dtype=jnp.float32, minval=1e-3, maxval=1.0 - 1e-3
    )
    y_true = (jax.random.uniform(k2, (B, C, W, H), dtype=jnp.float32) > 0.5).astype(jnp.float32)

    loss = sg_bce_loss(y_pred, y_true)
    jax.block_until_ready(loss)

    ref = _reference(y_pred, y_true)
    assert jnp.allclose(loss, ref, rtol=1e-5, atol=1e-6), (loss, ref)
    print("KERNEL_OK")
</pallas_src>

<mosaic_0001>
module attributes {stable_mosaic.version = 11 : i64} {
  func.func @_sg_bce_kernel(%arg0: i32, %arg1: i32, %arg2: memref<8x128xf32, #tpu.memory_space<vmem>>, %arg3: memref<8x128xf32, #tpu.memory_space<vmem>>, %arg4: memref<8x128xf32, #tpu.memory_space<vmem>>, %arg5: memref<8x128xf32, #tpu.memory_space<vmem>>) attributes {dimension_semantics = [#tpu.dimension_semantics<parallel>, #tpu.dimension_semantics<arbitrary>], iteration_bounds = array<i64: 2, 1>, scalar_prefetch = 0 : i64, scratch_operands = 1 : i64, tpu.core_type = #tpu.core_type<tc>, window_params = [{transform_indices = @transform_0, window_bounds = array<i64: 8, 128>}, {transform_indices = @transform_1, window_bounds = array<i64: 8, 128>}, {transform_indices = @transform_2, window_bounds = array<i64: 8, 128>}]} {
    %c0_i32 = arith.constant 0 : i32
    %0 = arith.cmpi eq, %arg1, %c0_i32 : i32
    %1 = arith.extui %0 : i1 to i32
    %c0_i32_0 = arith.constant 0 : i32
    %2 = arith.cmpi ne, %1, %c0_i32_0 : i32
    scf.if %2 {
      %cst_19 = arith.constant 0.000000e+00 : f32
      %38 = vector.broadcast %cst_19 : f32 to vector<8x128xf32>
      %c0_20 = arith.constant 0 : index
      %c0_21 = arith.constant 0 : index
      %39 = vector.load %arg5[%c0_20, %c0_21] : memref<8x128xf32, #tpu.memory_space<vmem>>, vector<8x128xf32>
      tpu.vector_store %arg5[%c0_20, %c0_21], %38 {strides = array<i32>} : memref<8x128xf32, #tpu.memory_space<vmem>>, vector<8x128xf32>,
    } else {
    }
    %c0 = arith.constant 0 : index
    %c0_1 = arith.constant 0 : index
    %3 = vector.load %arg2[%c0, %c0_1] : memref<8x128xf32, #tpu.memory_space<vmem>>, vector<8x128xf32>
    %c0_2 = arith.constant 0 : index
    %c0_3 = arith.constant 0 : index
    %4 = vector.load %arg3[%c0_2, %c0_3] : memref<8x128xf32, #tpu.memory_space<vmem>>, vector<8x128xf32>
    %cst = arith.constant 5.000000e-01 : f32
    %5 = vector.broadcast %cst : f32 to vector<8x128xf32>
    %6 = arith.subf %5, %3 : vector<8x128xf32>
    %cst_4 = arith.constant -5.000000e+00 : f32
    %7 = vector.broadcast %cst_4 : f32 to vector<8x128xf32>
    %8 = arith.mulf %7, %6 : vector<8x128xf32>
    %9 = math.exp %8 : vector<8x128xf32>
    %cst_5 = arith.constant 1.000000e+00 : f32
    %10 = vector.broadcast %cst_5 : f32 to vector<8x128xf32>
    %11 = arith.addf %10, %9 : vector<8x128xf32>
    %cst_6 = arith.constant 1.000000e+00 : f32
    %12 = vector.broadcast %cst_6 : f32 to vector<8x128xf32>
    %13 = arith.divf %12, %11 : vector<8x128xf32>
    %cst_7 = arith.constant 0.000000e+00 : f32
    %14 = vector.broadcast %cst_7 : f32 to vector<8x128xf32>
    %15 = arith.subf %14, %4 : vector<8x128xf32>
    %cst_8 = arith.constant 9.99999982E-15 : f32
    %16 = vector.broadcast %cst_8 : f32 to vector<8x128xf32>
    %17 = arith.addf %3, %16 : vector<8x128xf32>
    %18 = math.log %17 : vector<8x128xf32>
    %19 = arith.mulf %15, %18 : vector<8x128xf32>
    %cst_9 = arith.constant 1.000000e+00 : f32
    %20 = vector.broadcast %cst_9 : f32 to vector<8x128xf32>
    %21 = arith.subf %20, %4 : vector<8x128xf32>
    %22 = arith.mulf %21, %13 : vector<8x128xf32>
    %cst_10 = arith.constant 1.000000e+00 : f32
    %23 = vector.broadcast %cst_10 : f32 to vector<8x128xf32>
    %24 = arith.subf %23, %3 : vector<8x128xf32>
    %cst_11 = arith.constant 9.99999982E-15 : f32
    %25 = vector.broadcast %cst_11 : f32 to vector<8x128xf32>
    %26 = arith.addf %24, %25 : vector<8x128xf32>
    %27 = math.log %26 : vector<8x128xf32>
    %28 = arith.mulf %22, %27 : vector<8x128xf32>
    %29 = arith.subf %19, %28 : vector<8x128xf32>
    %c0_12 = arith.constant 0 : index
    %c0_13 = arith.constant 0 : index
    %30 = vector.load %arg5[%c0_12, %c0_13] : memref<8x128xf32, #tpu.memory_space<vmem>>, vector<8x128xf32>
    %31 = vector.shape_cast %29 : vector<8x128xf32> to vector<1x8x128xf32>
    %cst_14 = arith.constant dense<0.000000e+00> : vector<8x128xf32>
    %32 = vector.multi_reduction <add>, %31, %cst_14 [0] : vector<1x8x128xf32> to vector<8x128xf32>
    %33 = arith.addf %30, %32 : vector<8x128xf32>
    %c0_15 = arith.constant 0 : index
    %c0_16 = arith.constant 0 : index
    %34 = vector.load %arg5[%c0_15, %c0_16] : memref<8x128xf32, #tpu.memory_space<vmem>>, vector<8x128xf32>
    tpu.vector_store %arg5[%c0_15, %c0_16], %33 {strides = array<i32>} : memref<8x128xf32, #tpu.memory_space<vmem>>, vector<8x128xf32>,
    %c0_i32_17 = arith.constant 0 : i32
    %35 = arith.cmpi eq, %arg1, %c0_i32_17 : i32
    %36 = arith.extui %35 : i1 to i32
    %c0_i32_18 = arith.constant 0 : i32
    %37 = arith.cmpi ne, %36, %c0_i32_18 : i32
    scf.if %37 {
      %c0_19 = arith.constant 0 : index
      %c0_20 = arith.constant 0 : index
      %38 = vector.load %arg5[%c0_19, %c0_20] : memref<8x128xf32, #tpu.memory_space<vmem>>, vector<8x128xf32>
      %cst_21 = arith.constant 4.8828125E-4 : f32
      %39 = vector.broadcast %cst_21 : f32 to vector<8x128xf32>
      %40 = arith.mulf %38, %39 : vector<8x128xf32>
      %c0_22 = arith.constant 0 : index
      %c0_23 = arith.constant 0 : index
      %41 = vector.load %arg4[%c0_22, %c0_23] : memref<8x128xf32, #tpu.memory_space<vmem>>, vector<8x128xf32>
      tpu.vector_store %arg4[%c0_22, %c0_23], %40 {strides = array<i32>} : memref<8x128xf32, #tpu.memory_space<vmem>>, vector<8x128xf32>,
    } else {
    }
    return
  }
  func.func @transform_0(%arg0: i32, %arg1: i32) -> (i32, i32) {
    %c1_i32 = arith.constant 1 : i32
    %0 = arith.muli %arg0, %c1_i32 : i32
    %1 = arith.addi %0, %arg1 : i32
    %c0_i32 = arith.constant 0 : i32
    %c0_i32_0 = arith.constant 0 : i32
    return %1, %c0_i32 : i32, i32
  }
  func.func @transform_1(%arg0: i32, %arg1: i32) -> (i32, i32) {
    %c1_i32 = arith.constant 1 : i32
    %0 = arith.muli %arg0, %c1_i32 : i32
    %1 = arith.addi %0, %arg1 : i32
    %c0_i32 = arith.constant 0 : i32
    %c0_i32_0 = arith.constant 0 : i32
    return %1, %c0_i32 : i32, i32
  }
  func.func @transform_2(%arg0: i32, %arg1: i32) -> (i32, i32) {
    %c0_i32 = arith.constant 0 : i32
    %c0_i32_0 = arith.constant 0 : i32
    return %arg0, %c0_i32 : i32, i32
  }
}

</mosaic_0001>

<bundles_post_ra>
// kernel: tpu_custom_call.1
= control target key start
LH: loop header
LB: loop body
LE: loop exit
PB: predicated region body
PF: predicated region fallthrough
CT: control target
= control target key end

     0   :  { %7 = vsyncpa [#allocation4], 0  ;;  %s776_s0 = inlined_call_operand.hbm [shape: f32[16,128], index: 0, kind: input, shape index: {}]   ;;  %s777_s1 = inlined_call_operand.hbm [shape: f32[16,128], index: 1, kind: input, shape index: {}]   ;;  %s778_s2 = inlined_call_operand.hbm [shape: f32[16,128], index: 2, kind: output, shape index: {}]  }
   0x1   :  { %9 = vsyncpa [#allocation4 + $0x1], 0 }
   0x2   :  { %10 = vsyncpa [#allocation7], 0 }
   0x3   :  { %12 = vsyncpa [#allocation7 + $0x1], 0 }
   0x4   :  { %13 = vsyncpa [#allocation5], 0 }
   0x5   :  { %15 = vsyncpa [#allocation5 + $0x1], 0  ;;  %s643_s9 = smov 0   ;;  %s645_s10 = smov 0  }
   0x6   :  { %s647_s11 = smov 0   ;;  %s649_s12 = smov 0  }
   0x7   :  { %s651_s13 = smov 0   ;;  %s653_s14 = smov 0  }
   0x8 LB: > { %s389_s15 = sadd.s32 4294967295, %s626_s14   ;;  %s390_s16 = sadd.s32 4294967294, %s626_s14   ;;  %s626_s14 = sphi %s653_s14, %s21_s14   ;;  %s622_s13 = sphi %s651_s13, %s787_s13   ;;  %s618_s12 = sphi %s649_s12, %s786_s12   ;;  %s614_s11 = sphi %s647_s11, %s785_s11   ;;  %s610_s10 = sphi %s645_s10, %s784_s10   ;;  %s606_s9 = sphi %s643_s9, %s783_s9  }
   0x9   : > { %s33_s17 = sadd.s32 1, %s622_s13  ;;  %s42_s18 = sadd.s32 1, %s614_s11 }
   0xa   : > { %p35_p0 = scmp.ge.s32.totalorder %s33_s17, 2  ;;  %p49_p1 = scmp.ne.s32.totalorder %s614_s11, %s610_s10 }
   0xb   : > { %p50_p2 = scmp.eq.s32.totalorder %s626_s14, 0  ;;  %p55_p3 = scmp.ne.s32.totalorder %s610_s10, %s606_s9 }
   0xc   : > { %s789_s17 = smov (%p35_p0, %s33_s17), 0  ;;  %p56_p5 = scmp.eq.s32.totalorder %s389_s15, 0 }
   0xd   : > { %p684_p4 = por %p50_p2, %p49_p1  ;;  %s39_s20 = ssub.s32 %s622_s13, %s789_s17 }
   0xe   : > { %p107_p6 = scmp.eq.s32.totalorder %s389_s15, 1  ;;  %p40_p7 = scmp.eq.s32.totalorder %s39_s20, 0 }
   0xf   : > { %p690_p8 = por %p56_p5, %p55_p3  ;;  %p113_p10 = scmp.eq.s32.totalorder %s390_s16, 1 }
  0x10   : > { %p694_p9 = por %p107_p6, %p49_p1  ;;  %p392_p12 = scmp.ge.s32.totalorder %s626_s14, 2 }
  0x11   : > { %s699_s23 = scalar_select %p40_p7, %s614_s11, %s42_s18  }
  0x12   : > { %p701_p11 = por %p113_p10, %p55_p3  ;;  %p422_p13 = scmp.lt.s32.totalorder %s626_s14, 2 }
  0x13   : > { %s133_s25 = sand.u32 1, %s614_s11   ;;  %s394_s27 = sshll.u32 %s622_s13, 3 }
  0x14   : > { %s393_s26 = sshll.u32 %s133_s25, 3  ;;  %s142_s30 = scalar_lea.hbm %s776_s0, %s394_s27 }
  0x15   : > { %s137_s3 = scalar_lea.vmem [#allocation3], %s393_s26  ;;  %s144_s5 = sshll.u32 %s142_s30, 4  ;;  %s145_s5 = int_to_ptr.hbm [resolvable:$true] %s144_s5 }
  0x16   : > { %s146_s4 = sshll.u32 %s137_s3, 4  ;;  %p412_p0 = pnand %p422_p13, %p684_p4  ;;  %s147_s4 = int_to_ptr.vmem [resolvable:$true] %s146_s4 }
  0x17   : > { %p397_p1 = scmp.ge.s32.totalorder %s626_s14, 1  ;;  %p171_p2 = scmp.lt.s32.totalorder %s626_s14, 3 }
  0x18   : > { %s134_s6 = scalar_lea.sflag [#allocation4], %s133_s25  ;;  %s162_s15 = scalar_lea.hbm %s777_s1, %s394_s27 }
  0x19   : > { %414 = dma.hbm_to_vmem [thread:$0]  (!%p412_p0), %s145_s5, 128, %s147_s4, %s134_s6  }
  0x1a   : > { %p172_p3 = pnand %p397_p1, %p171_p2  ;;  %s157_s16 = scalar_lea.vmem [#allocation6], %s393_s26 }
  0x1b   : > { %s166_s18 = sshll.u32 %s157_s16, 4  ;;  %s164_s20 = sshll.u32 %s162_s15, 4  ;;  %s167_s18 = int_to_ptr.vmem [resolvable:$true] %s166_s18  ;;  %s165_s20 = int_to_ptr.hbm [resolvable:$true] %s164_s20 }
  0x1c   : > { %s154_s28 = scalar_lea.sflag [#allocation7], %s133_s25  ;;  %175 = sbr.rel (%p172_p3) target bundleno = 80 (0x50), region = 28 }
  0x1d   : > { %417 = dma.hbm_to_vmem [thread:$0]  (!%p412_p0), %s165_s20, 128, %s167_s18, %s154_s28  }
  0x1e   : > { %s720_s19 = sand.u32 (!%p172_p3), 1, %s610_s10  }
  0x1f   : > { %s723_s29 = sshll.u32 (!%p172_p3), %s720_s19, 3  ;;  %s178_s30 = scalar_lea.sflag (!%p172_p3), [#allocation4], %s720_s19 }
  0x20   : > { %s181_s3 = scalar_lea.vmem (!%p172_p3), [#allocation3], %s723_s29 }
  0x21   : > { %593 = dma.done.wait (%p690_p8), %s178_s30, 128  }
  0x22   : > { %595 = vsyncadd (%p690_p8), %s178_s30, 4294967168  ;;  %s188_s25 = scalar_lea.sflag [#allocation7], %s720_s19  ;;  %s191_s26 = scalar_lea.vmem [#allocation6], %s723_s29 }
  0x23   : > { %597 = dma.done.wait (%p690_p8), %s188_s25, 128  }
  0x24   : > { %599 = vsyncadd (%p690_p8), %s188_s25, 4294967168  ;;  %v225_v0 = vld [vmem:[%s181_s3] sm:$0xff]  ;;  %v226_v15 = vld [vmem:[%s191_s26] sm:$0xff]  ;;  %s402_s21 = sshll.u32 %s618_s12, 3  ;;  %s217_s6 = scalar_lea.vmem [#allocation8], %s723_s29 }
  0x25   : > { %v227_v1 = vsub.f32 0.5, %v225_v0  ;;  %v254_v6 = vsub.f32 1.0, %v225_v0  ;;  %v248_v7 = vadd.f32 1e-14, %v225_v0  ;;  %v247_v19 = vsub.f32 0.0, %v226_v15  ;;  %s281_s5 = scalar_lea.hbm %s778_s2, %s402_s21  ;;  %s283_s7 = sshll.u32 %s217_s6, 4  ;;  %s284_s7 = int_to_ptr.vmem [resolvable:$true] %s283_s7 }
  0x26   : > { %v252_v22 = vsub.f32 1.0, %v226_v15  ;;  %s285_s8 = sshll.u32 %s281_s5, 4  ;;  %s271_s12 = scalar_lea.sflag [#allocation5], %s720_s19  ;;  %s286_s8 = int_to_ptr.hbm [resolvable:$true] %s285_s8 }
  0x27   : > { %v228_v2 = vmul.f32 -5.0, %v227_v1  ;;  %v255_v8 = vadd.f32 1e-14, %v254_v6  ;;  %s554_s15 = sshra.s32 %s286_s8, 4  ;;  %s560_s28 = scalar_lea.hbm %s778_s2, 16  ;;  %s555_s15 = int_to_ptr.hbm [resolvable:$true] %s554_s15 }
  0x28   : > { %s556_s16 = scalar_lea.hbm %s555_s15, 8  ;;  %p561_p7 = scmp.lt.s32.totalorder %s555_s15, %s778_s2 }
  0x29   : > { %v229_v3 = vmul.f32 1.442695, %v228_v2  ;;  %p557_p4 = scmp.ne.s32.totalorder %s555_s15, %s556_s16  ;;  %p562_p8 = scmp.lt.s32.totalorder %s560_s28, %s556_s16 }
  0x2b   : > { %472 = vpow2.f32 %v229_v3  ;;  %p558_p5 = pnand %p557_p4, %p694_p9  ;;  %p563_p10 = por %p562_p8, %p561_p7 }
  0x2d   : > { %p559_p6 = pneg %p558_p5 }
  0x2f   : > { %p564_p13 = pnand %p563_p10, %p559_p6 }
  0x31   : > { %v473_v4 = vpop.eup %472 }
  0x32   : > { %v231_v5 = vadd.f32 1.0, %v473_v4 }
  0x34   : > { %474 = vrcp.f32 %v231_v5  ;;  %v243_v11 = vand.u32 2147483648, %v231_v5  ;;  %vm237_vm0 = vweird.f32 %v231_v5  ;;  %v241_v13 = vand.u32 2147483647, %v231_v5 }
  0x35   : > { %476 = vlog2.f32 %v248_v7 }
  0x36   : > { %478 = vlog2.f32 %v255_v8  ;;  %v244_v18 = vor.u32 1.1754944e-38, %v243_v11  ;;  %vm242_vm3 = vcmp.eq.f32.partialorder %v241_v13, 8.507059e+37 }
  0x3a   : > { %v475_v9 = vpop.eup %474 }
  0x3b   : > { %v233_v10 = vmul.f32 %v475_v9, %v231_v5  ;;  %vm238_vm1 = vweird.f32 %v475_v9  ;;  %v477_v14 = vpop.eup %476 }
  0x3c   : > { %v479_v17 = vpop.eup %478  ;;  %vm239_vm2 = vmor %vm237_vm0, %vm238_vm1  ;;  %v250_v21 = vmul.f32 0.6931472, %v477_v14 }
  0x3d   : > { %v234_v12 = vsub.f32 1.0, %v233_v10  ;;  %v257_v24 = vmul.f32 0.6931472, %v479_v17 }
  0x3e   : > { %v251_v26 = vmul.f32 %v250_v21, %v247_v19 }
  0x3f   : > { %v235_v16 = vmul.f32 %v475_v9, %v234_v12 }
  0x41   : > { %v236_v20 = vadd.f32 %v475_v9, %v235_v16 }
  0x43   : > { %v240_v23 = vsel %vm239_vm2, %v475_v9, %v236_v20 }
  0x44   : > { %v245_v25 = vsel %vm242_vm3, %v244_v18, %v240_v23 }
  0x45   : > { %v253_v27 = vmul.f32 %v252_v22, %v245_v25 }
  0x47   : > { %v258_v28 = vmul.f32 %v257_v24, %v253_v27 }
  0x49   : > { %v259_v29 = vsub.f32 %v251_v26, %v258_v28 }
  0x4b   : > { %v268_v30 = vmul.f32 0.00048828125, %v259_v29 }
  0x4d   : > { %269 = vst [vmem:[%s217_s6] sm:$0xff] %v268_v30 }
  0x4e   : > { %567 = shalt.err (!%p564_p13)
}
  0x4f   : > { %409 = dma.vmem_to_hbm [thread:$0]  (%p694_p9), %s284_s7, 128, %s286_s8, %s271_s12  }
  0x50 PF: > { %s297_s19 = sand.u32 1, %s606_s9   ;;  %p419_p0 = pnand %p392_p12, %p701_p11 }
  0x51   : > { %s298_s3 = scalar_lea.sflag [#allocation5], %s297_s19 }
  0x52   : > { %p420_p1 = pneg %p419_p0 }
  0x54   : > { %601 = dma.done.wait (%p420_p1), %s298_s3, 128  }
  0x55   : > { %603 = vsyncadd (%p420_p1), %s298_s3, 4294967168  ;;  %s21_s14 = sadd.s32 1, %s626_s14   ;;  %s783_s9 = smov %s610_s10 }
  0x56   : > { %p18_p2 = scmp.ge.s32.totalorder %s21_s14, 4   ;;  %s784_s10 = smov %s614_s11 }
  0x57   : > { %s785_s11 = smov %s699_s23  ;;  %s786_s12 = smov %s622_s13 }
  0x58   : > { %s787_s13 = smov %s789_s17  ;;  %20 = sbr.rel (!%p18_p2) target bundleno = 8 (0x8), region = 94 }
  0x5d   :  { %304 = vsyncpa [#allocation4], 1 }
  0x5e   :  { %306 = vsyncpa [#allocation4 + $0x1], 1 }
  0x5f   :  { %307 = vsyncpa [#allocation7], 1 }
  0x60   :  { %309 = vsyncpa [#allocation7 + $0x1], 1 }
  0x61   :  { %310 = vsyncpa [#allocation5], 1 }
  0x62   :  { %312 = vsyncpa [#allocation5 + $0x1], 1 }

</bundles_post_ra>
